<compile_context>
chip_gen: v6e
topology: v6e:2x2x1
jax: 0.10.0
libtpu: 0.0.40
codegen_flags: <defaults>
</compile_context>

<pallas_src>
import jax
import jax.numpy as jnp
from jax.experimental import pallas as pl
from jax.experimental.pallas import tpu as pltpu

_BN_EPS = 1e-5
_LANE = 128
_SUBLANE = 8


def _round_up(v, m):
    return ((v + m - 1) // m) * m


def _vmem_budgets(max_block_bytes=None):
    """Generation-aware (target_block_bytes, vmem_limit_bytes)."""
    vmem_cap = None
    try:
        info = pltpu.get_tpu_info()
        vmem_cap = getattr(info, "vmem_capacity_bytes", None)
    except Exception:
        vmem_cap = None
    if vmem_cap is None:
        vmem_cap = 64 << 20                      # conservative (v7x-sized)
    if vmem_cap >= (96 << 20):                   # v5e / v6e: 128 MiB VMEM
        target_block = 12 << 20
        vmem_limit_cap = 96 << 20
    else:                                        # v7x: 64 MiB physical VMEM
        target_block = 6 << 20
        vmem_limit_cap = 44 << 20
    if max_block_bytes is not None:
        target_block = int(max_block_bytes)
    return target_block, vmem_limit_cap


# ---------------- kernels ----------------

def _make_fused_kernel(inv_hw):
    def _kernel(x_ref, scale_ref, bias_ref, o_ref):
        # x_ref: (tile_r, HW); scale/bias: (tile_r, 1) f32
        # AdaptiveAvgPool2d((1,1)): f32-accumulated row sum (no f32 block copy)
        m = jnp.sum(x_ref[...], axis=-1, keepdims=True, dtype=jnp.float32) * inv_hw
        # folded depthwise 1x1 conv + eval-BN:  c = scale * m + bias
        c = scale_ref[...] * m + bias_ref[...]
        s = jax.nn.sigmoid(c)                                   # (tile_r, 1) f32
        # gate multiply in the I/O dtype (bf16 stays bf16); re-read the ref
        o_ref[...] = x_ref[...] * s.astype(o_ref.dtype)
    return _kernel


def _make_gate_kernel(inv_hw, hw_total, tile_hw, ragged):
    def _kernel(x_ref, scale_ref, bias_ref, g_ref):
        j = pl.program_id(1)

        @pl.when(j == 0)
        def _():
            g_ref[...] = jnp.zeros_like(g_ref)

        x = x_ref[...]
        if ragged:
            col = jax.lax.broadcasted_iota(jnp.int32, x.shape, 1) + j * tile_hw
            x = jnp.where(col < hw_total, x, jnp.zeros_like(x))
        g_ref[...] += jnp.sum(x, axis=-1, keepdims=True, dtype=jnp.float32)

        @pl.when(j == pl.num_programs(1) - 1)
        def _():
            c = scale_ref[...] * (g_ref[...] * inv_hw) + bias_ref[...]
            g_ref[...] = jax.nn.sigmoid(c)
    return _kernel


def _apply_kernel(x_ref, g_ref, o_ref):
    o_ref[...] = x_ref[...] * g_ref[...].astype(o_ref.dtype)


# ---------------- wrapper ----------------

def channel_calibration(x, conv_w, bn_gamma, bn_beta, bn_mean, bn_var,
                        *, max_block_bytes=None):
    """x: (N, C, H, W). conv_w / bn_*: (C,). Returns same shape/dtype as x."""
    N, C, H, W = x.shape
    HW = H * W
    R = N * C
    itemsize = jnp.dtype(x.dtype).itemsize
    inv_hw = 1.0 / float(HW)

    # ---- fold conv weight + BN (eval) into per-channel scale / bias ----
    inv_std = jax.lax.rsqrt(bn_var.astype(jnp.float32) + _BN_EPS)
    g = bn_gamma.astype(jnp.float32) * inv_std
    scale_c = g * conv_w.astype(jnp.float32)                              # (C,)
    bias_c = bn_beta.astype(jnp.float32) - g * bn_mean.astype(jnp.float32)
    scale_r = jnp.broadcast_to(scale_c, (N, C)).reshape(R, 1)             # (R,1)
    bias_r = jnp.broadcast_to(bias_c, (N, C)).reshape(R, 1)

    x2 = x.reshape(R, HW)                        # free, contiguous reshape

    target_block, vmem_cap = _vmem_budgets(max_block_bytes)

    if _SUBLANE * HW * itemsize <= target_block:
        # ---- single fused pass: full-HW rows, row tiling only ----
        tile_r = max(_SUBLANE, target_block // max(1, HW * itemsize))
        tile_r = (tile_r // _SUBLANE) * _SUBLANE
        if tile_r >= R:
            tile_r = R                           # full extent: any R allowed
        grid = (pl.cdiv(R, tile_r),)
        block_bytes = tile_r * HW * itemsize
        vmem_bytes = int(min(max(5 * block_bytes + (4 << 20), 32 << 20), vmem_cap))

        x_spec = pl.BlockSpec((tile_r, HW), lambda i: (i, 0))
        p_spec = pl.BlockSpec((tile_r, 1), lambda i: (i, 0))

        out = pl.pallas_call(
            _make_fused_kernel(inv_hw),
            out_shape=jax.ShapeDtypeStruct((R, HW), x.dtype),
            grid_spec=pltpu.PrefetchScalarGridSpec(
                num_scalar_prefetch=0, grid=grid,
                in_specs=[x_spec, p_spec, p_spec],
                out_specs=x_spec),
            compiler_params=pltpu.CompilerParams(
                dimension_semantics=("parallel",),
                vmem_limit_bytes=vmem_bytes),
            cost_estimate=pl.CostEstimate(
                flops=3 * R * HW, transcendentals=R,
                bytes_accessed=2 * R * HW * itemsize),
        )(x2, scale_r, bias_r)
        return out.reshape(N, C, H, W)

    # ---- two-pass fallback for very large feature maps: tile HW too ----
    tile_r = _SUBLANE
    tile_hw = max(_LANE, (target_block // (tile_r * itemsize)) // _LANE * _LANE)
    tile_hw = min(tile_hw, _round_up(HW, _LANE))
    grid = (pl.cdiv(R, tile_r), pl.cdiv(HW, tile_hw))
    ragged = (HW % tile_hw) != 0
    block_bytes = tile_r * tile_hw * itemsize
    vmem_bytes = int(min(max(5 * block_bytes + (4 << 20), 32 << 20), vmem_cap))

    x_spec = pl.BlockSpec((tile_r, tile_hw), lambda i, j: (i, j))
    p_spec = pl.BlockSpec((tile_r, 1), lambda i, j: (i, 0))

    # pass 1: per-row sum accumulated across HW tiles -> sigmoid gate (R, 1) f32
    gate = pl.pallas_call(
        _make_gate_kernel(inv_hw, HW, tile_hw, ragged),
        out_shape=jax.ShapeDtypeStruct((R, 1), jnp.float32),
        grid_spec=pltpu.PrefetchScalarGridSpec(
            num_scalar_prefetch=0, grid=grid,
            in_specs=[x_spec, p_spec, p_spec],
            out_specs=p_spec),
        compiler_params=pltpu.CompilerParams(
            dimension_semantics=("parallel", "arbitrary"),
            vmem_limit_bytes=vmem_bytes),
        cost_estimate=pl.CostEstimate(
            flops=2 * R * HW, transcendentals=R,
            bytes_accessed=R * HW * itemsize),
    )(x2, scale_r, bias_r)

    # pass 2: apply the per-row gate
    out = pl.pallas_call(
        _apply_kernel,
        out_shape=jax.ShapeDtypeStruct((R, HW), x.dtype),
        grid_spec=pltpu.PrefetchScalarGridSpec(
            num_scalar_prefetch=0, grid=grid,
            in_specs=[x_spec, p_spec],
            out_specs=x_spec),
        compiler_params=pltpu.CompilerParams(
            dimension_semantics=("parallel", "parallel"),
            vmem_limit_bytes=vmem_bytes),
        cost_estimate=pl.CostEstimate(
            flops=R * HW, transcendentals=0,
            bytes_accessed=2 * R * HW * itemsize),
    )(x2, gate)
    return out.reshape(N, C, H, W)


# ---------------- reference & tests ----------------

def _reference(x, conv_w, bn_gamma, bn_beta, bn_mean, bn_var):
    m = jnp.mean(x.astype(jnp.float32), axis=(2, 3), keepdims=True)   # (N,C,1,1)
    c = conv_w.reshape(1, -1, 1, 1) * m
    c = bn_gamma.reshape(1, -1, 1, 1) * (c - bn_mean.reshape(1, -1, 1, 1)) \
        / jnp.sqrt(bn_var.reshape(1, -1, 1, 1) + _BN_EPS) \
        + bn_beta.reshape(1, -1, 1, 1)
    return (x.astype(jnp.float32) * jax.nn.sigmoid(c)).astype(x.dtype)


def _make_params(key, C):
    kw, kg, kb, km, kv = jax.random.split(key, 5)
    conv_w = jax.random.normal(kw, (C,), dtype=jnp.float32) * 0.5
    bn_gamma = 1.0 + 0.1 * jax.random.normal(kg, (C,), dtype=jnp.float32)
    bn_beta = 0.1 * jax.random.normal(kb, (C,), dtype=jnp.float32)
    bn_mean = 0.1 * jax.random.normal(km, (C,), dtype=jnp.float32)
    bn_var = jnp.abs(1.0 + 0.1 * jax.random.normal(kv, (C,), dtype=jnp.float32))
    return conv_w, bn_gamma, bn_beta, bn_mean, bn_var


if __name__ == "__main__":
    key = jax.random.PRNGKey(0)
    kx, kp = jax.random.split(key)

    # 1) aligned f32 case (fused single-pass path)
    N, C, H, W = 2, 4, 16, 16
    x = jax.random.normal(kx, (N, C, H, W), dtype=jnp.float32)
    params = _make_params(kp, C)
    out = jax.block_until_ready(channel_calibration(x, *params))
    ref = _reference(x, *params)
    assert out.shape == (N, C, H, W) and out.dtype == x.dtype
    assert jnp.allclose(out, ref, atol=1e-5, rtol=1e-5), "mismatch vs reference (f32)"

    # 2) non-128-aligned HW, non-8-aligned C (fused path, ragged lanes handled by Pallas)
    N2, C2, H2, W2 = 2, 12, 14, 14
    x2 = jax.random.normal(kx, (N2, C2, H2, W2), dtype=jnp.float32)
    params2 = _make_params(kp, C2)
    out2 = jax.block_until_ready(channel_calibration(x2, *params2))
    ref2 = _reference(x2, *params2)
    assert jnp.allclose(out2, ref2, atol=1e-5, rtol=1e-5), "mismatch vs reference (ragged)"

    # 3) forced two-pass fallback (exercises HW tiling + masked reduction path)
    out3 = jax.block_until_ready(
        channel_calibration(x2, *params2, max_block_bytes=4096))
    assert jnp.allclose(out3, ref2, atol=1e-5, rtol=1e-5), "mismatch vs reference (two-pass)"

    # 4) bf16 I/O (gate multiply stays in bf16); generous tolerance for bf16 rounding
    xb = x.astype(jnp.bfloat16)
    outb = jax.block_until_ready(channel_calibration(xb, *params))
    refb = _reference(xb, *params)
    assert outb.dtype == jnp.bfloat16
    assert jnp.allclose(outb.astype(jnp.float32), refb.astype(jnp.float32),
                        atol=5e-2, rtol=5e-2), "mismatch vs reference (bf16)"

    print("KERNEL_OK")
</pallas_src>

<mosaic_0001>
module attributes {stable_mosaic.version = 11 : i64} {
  func.func @_kernel(%arg0: i32, %arg1: memref<8x256xf32, #tpu.memory_space<vmem>>, %arg2: memref<8x1xf32, #tpu.memory_space<vmem>>, %arg3: memref<8x1xf32, #tpu.memory_space<vmem>>, %arg4: memref<8x256xf32, #tpu.memory_space<vmem>>) attributes {dimension_semantics = [#tpu.dimension_semantics<parallel>], iteration_bounds = array<i64: 1>, scalar_prefetch = 0 : i64, scratch_operands = 0 : i64, tpu.core_type = #tpu.core_type<tc>, window_params = [{transform_indices = @transform_0, window_bounds = array<i64: 8, 256>}, {transform_indices = @transform_1, window_bounds = array<i64: 8, 1>}, {transform_indices = @transform_2, window_bounds = array<i64: 8, 1>}, {transform_indices = @transform_3, window_bounds = array<i64: 8, 256>}]} {
    %c0 = arith.constant 0 : index
    %c0_0 = arith.constant 0 : index
    %0 = vector.load %arg1[%c0, %c0_0] : memref<8x256xf32, #tpu.memory_space<vmem>>, vector<8x256xf32>
    %cst = arith.constant dense<0.000000e+00> : vector<8xf32>
    %1 = vector.multi_reduction <add>, %0, %cst [1] : vector<8x256xf32> to vector<8xf32>
    %2 = vector.shape_cast %1 : vector<8xf32> to vector<8x1xf32>
    %cst_1 = arith.constant 3.906250e-03 : f32
    %3 = vector.broadcast %cst_1 : f32 to vector<8x1xf32>
    %4 = arith.mulf %2, %3 : vector<8x1xf32>
    %c0_2 = arith.constant 0 : index
    %c0_3 = arith.constant 0 : index
    %5 = vector.load %arg2[%c0_2, %c0_3] : memref<8x1xf32, #tpu.memory_space<vmem>>, vector<8x1xf32>
    %6 = arith.mulf %5, %4 : vector<8x1xf32>
    %c0_4 = arith.constant 0 : index
    %c0_5 = arith.constant 0 : index
    %7 = vector.load %arg3[%c0_4, %c0_5] : memref<8x1xf32, #tpu.memory_space<vmem>>, vector<8x1xf32>
    %8 = arith.addf %6, %7 : vector<8x1xf32>
    %9 = arith.negf %8 : vector<8x1xf32>
    %10 = math.exp %9 : vector<8x1xf32>
    %cst_6 = arith.constant 1.000000e+00 : f32
    %11 = vector.broadcast %cst_6 : f32 to vector<8x1xf32>
    %12 = arith.addf %11, %10 : vector<8x1xf32>
    %13 = arith.divf %11, %12 : vector<8x1xf32>
    %c0_7 = arith.constant 0 : index
    %c0_8 = arith.constant 0 : index
    %14 = vector.load %arg1[%c0_7, %c0_8] : memref<8x256xf32, #tpu.memory_space<vmem>>, vector<8x256xf32>
    %15 = vector.broadcast %13 : vector<8x1xf32> to vector<8x256xf32>
    %16 = arith.mulf %14, %15 : vector<8x256xf32>
    %c0_9 = arith.constant 0 : index
    %c0_10 = arith.constant 0 : index
    %17 = vector.load %arg4[%c0_9, %c0_10] : memref<8x256xf32, #tpu.memory_space<vmem>>, vector<8x256xf32>
    tpu.vector_store %arg4[%c0_9, %c0_10], %16 {strides = array<i32>} : memref<8x256xf32, #tpu.memory_space<vmem>>, vector<8x256xf32>,
    return
  }
  func.func @transform_0(%arg0: i32) -> (i32, i32) {
    %c0_i32 = arith.constant 0 : i32
    %c0_i32_0 = arith.constant 0 : i32
    return %arg0, %c0_i32 : i32, i32
  }
  func.func @transform_1(%arg0: i32) -> (i32, i32) {
    %c0_i32 = arith.constant 0 : i32
    %c0_i32_0 = arith.constant 0 : i32
    return %arg0, %c0_i32 : i32, i32
  }
  func.func @transform_2(%arg0: i32) -> (i32, i32) {
    %c0_i32 = arith.constant 0 : i32
    %c0_i32_0 = arith.constant 0 : i32
    return %arg0, %c0_i32 : i32, i32
  }
  func.func @transform_3(%arg0: i32) -> (i32, i32) {
    %c0_i32 = arith.constant 0 : i32
    %c0_i32_0 = arith.constant 0 : i32
    return %arg0, %c0_i32 : i32, i32
  }
}

</mosaic_0001>

<bundles_post_ra>
// kernel: tpu_custom_call.1
= control target key start
LH: loop header
LB: loop body
LE: loop exit
PB: predicated region body
PF: predicated region fallthrough
CT: control target
= control target key end

     0   :  { %s121_s0 = inlined_call_operand.vmem [shape: f32[8,256], index: 0, kind: input, shape index: {}]   ;;  %s122_s1 = inlined_call_operand.vmem [shape: f32[8,1], index: 1, kind: input, shape index: {}]   ;;  %s123_s2 = inlined_call_operand.vmem [shape: f32[8,1], index: 2, kind: input, shape index: {}]   ;;  %s124_s3 = inlined_call_operand.hbm [shape: f32[8,256], index: 3, kind: output, shape index: {}]  }
   0x1   :  { %v15_v0 = vld [vmem:[%s121_s0] sm:$0xff]  ;;  %v16_v1 = vld [vmem:[%s121_s0 + $0x8] sm:$0xff] }
   0x2   :  { %v17_v2 = vadd.f32 %v16_v1, %v15_v0 }
   0x3   :  { %8 = vsyncpa [#allocation3], 0  ;;  %v84_v3 = vmov 0   ;;  %v21_v4 = vld [vmem:[%s122_s1] sm:$0xff]  ;;  %s85_s0 = smov [#allocation2]  }
   0x4   :  { %18 = vadd.xlane.f32.xlu0 %v17_v2  ;;  %v23_v7 = vld [vmem:[%s123_s2] sm:$0xff]  ;;  %s46_s20 = sshll.u32 %s85_s0, 4  ;;  %s47_s20 = int_to_ptr.vmem [resolvable:$true] %s46_s20 }
   0x5   :  { %57 = vset.pattern.permute.xlu0 %v84_v3  ;;  %s62_s1 = scalar_lea.vmem %s47_s20, 256  ;;  %p67_p1 = scmp.lt.s32.totalorder %s47_s20, %s47_s20 }
   0x6   :  { %p63_p0 = scmp.ne.s32.totalorder %s47_s20, %s62_s1  ;;  %p68_p2 = scmp.lt.s32.totalorder %s62_s1, %s62_s1 }
   0x8   :  { %p69_p3 = por %p68_p2, %p67_p1 }
   0xa   :  { %p70_p4 = pnand %p69_p3, %p63_p0 }
  0x8d   :  { %v19_v5 = vpop.xlane.xlu0 %18 }
  0x8e   :  { %v20_v6 = vmul.f32 0.00390625, %v19_v5 }
  0x90   :  { %v22_v8 = vmul.f32 %v21_v4, %v20_v6 }
  0x92   :  { %v24_v9 = vadd.f32 %v23_v7, %v22_v8 }
  0x94   :  { %v54_v10 = vmul.f32 -1.442695, %v24_v9 }
  0x96   :  { %58 = vpow2.f32 %v54_v10 }
  0xa3   :  { %v59_v11 = vpop.eup %58 }
  0xa4   :  { %v28_v12 = vadd.f32 1.0, %v59_v11 }
  0xa6   :  { %60 = vrcp.f32 %v28_v12 }
  0xb3   :  { %v61_v13 = vpop.eup %60 }
  0xb4   :  { %33 = vperm.xlu0 %57, %v61_v13  }
 0x12f   :  { %v34_v14 = vpop.permute.xlu0 %33 }
 0x130   :  { %v36_v15 = vmul.f32 %v34_v14, %v15_v0  ;;  %v37_v16 = vmul.f32 %v34_v14, %v16_v1 }
 0x132   :  { %38 = vst [vmem:[#allocation2] sm:$0xff] %v36_v15  ;;  %39 = vst [vmem:[#allocation2 + $0x8] sm:$0xff] %v37_v16 }
 0x133   :  { %73 = shalt.err (!%p70_p4)
}
 0x134   :  { %49 = dma.vmem_to_hbm [thread:$0]  %s47_s20, 256, %s124_s3, [#allocation3]  }
 0x135   :  { %82 = dma.done.wait [#allocation3], 256  }
 0x136   :  { %83 = vsyncadd [#allocation3], 4294967040 }
 0x137   :  { %53 = vsyncpa [#allocation3], 1 }

</bundles_post_ra>
